<compile_context>
chip_gen: v6e
topology: v6e:2x2x1
jax: 0.10.0
libtpu: 0.0.40
codegen_flags: <defaults>
</compile_context>

<pallas_src>
from functools import partial

import jax
import jax.numpy as jnp
from jax.experimental import pallas as pl
from jax.experimental.pallas import tpu as pltpu

LANES = 128


def repset_kernel(x_ref, ae_w_ref, ae_b_ref, wc_ref, fc1_w_ref, fc1_b_ref,
                  head_w_ref, head_b_ref, out_ref, *, n_hidden_padded,
                  n_elements):
    od = wc_ref.dtype                                    # matmul operand dtype
    TB, N, D_in = x_ref.shape
    x = x_ref[...].reshape(TB * N, D_in)                 # flatten bags -> MXU M dim

    # base_network: Linear + ReLU (f32 accumulation, f32 bias/ReLU)
    t = jnp.maximum(
        jnp.dot(x, ae_w_ref[...], preferred_element_type=jnp.float32)
        + ae_b_ref[...], 0.0)                            # (TB*N, D_ae)

    # t @ Wc, ReLU  -- Wc columns are laid out lane-aligned as (E, H_pad)
    s = jnp.maximum(
        jnp.dot(t.astype(od), wc_ref[...],
                preferred_element_type=jnp.float32), 0.0)  # (TB*N, E*H_pad)

    # max over the E elements: E-1 full-vreg maxima (each slab 128-lane aligned)
    Hp = n_hidden_padded
    m = s[:, 0:Hp]
    for e in range(1, n_elements):                       # static unroll, E small
        m = jnp.maximum(m, s[:, e * Hp:(e + 1) * Hp])    # (TB*N, H_pad)

    # sum over the instances of each bag
    bag = jnp.sum(m.reshape(TB, N, Hp), axis=1)          # (TB, H_pad)

    # fc1 + ReLU, once for the whole bag tile
    h = jnp.maximum(
        jnp.dot(bag.astype(od), fc1_w_ref[...],
                preferred_element_type=jnp.float32)
        + fc1_b_ref[...], 0.0)                           # (TB, 32)

    # all task heads fused into one (32, total_pad) matmul; lane-dense store
    out = jnp.dot(h.astype(od), head_w_ref[...],
                  preferred_element_type=jnp.float32) + head_b_ref[...]
    out_ref[...] = out.astype(out_ref.dtype)             # (TB, total_pad)


def _round_up(v, m):
    return pl.cdiv(v, m) * m


def _choose_bag_tile(B, N):
    # enough rows (TB*N >= 256) per step to fill a 256-wide MXU pass;
    # whole batch in one grid step when B is small.
    tb = max(1, pl.cdiv(256, N))
    if tb >= B:
        return B
    return _round_up(tb, 8)          # multiple of 8 sublanes when tiling


def approx_repset_forward(x, params, *, n_hidden_sets, n_elements, task_dims,
                          operand_dtype=jnp.float32):
    ae_w, ae_b, wc, fc1_w, fc1_b, head_w, head_b = params
    B, N, D_in = x.shape
    D_ae = ae_w.shape[1]
    H, E = n_hidden_sets, n_elements
    fc_hidden = fc1_w.shape[1]
    total = head_w.shape[1]

    Hp = _round_up(H, LANES)         # pad H so each e-slab is a full-vreg slice
    Tp = _round_up(total, LANES)     # lane-dense output block

    # Wc column c = e*H + h  ->  padded column e*Hp + h, zeros elsewhere
    wc_pad = (jnp.zeros((D_ae, E, Hp), wc.dtype)
              .at[:, :, :H].set(wc.reshape(D_ae, E, H))
              .reshape(D_ae, E * Hp))
    fc1_w_pad = jnp.zeros((Hp, fc_hidden), fc1_w.dtype).at[:H, :].set(fc1_w)
    head_w_pad = jnp.zeros((fc_hidden, Tp), head_w.dtype).at[:, :total].set(head_w)
    head_b_pad = jnp.zeros((1, Tp), head_b.dtype).at[:, :total].set(head_b)

    # bag-tile the grid; pad the batch to a whole number of tiles
    TB = _choose_bag_tile(B, N)
    num_tiles = pl.cdiv(B, TB)
    Bp = num_tiles * TB
    if Bp != B:
        x = jnp.concatenate([x, jnp.zeros((Bp - B, N, D_in), x.dtype)], axis=0)

    # matmul operands (optionally bf16 on v6e/v7x); biases stay f32
    xq = x.astype(operand_dtype)
    ae_wq = ae_w.astype(operand_dtype)
    wcq = wc_pad.astype(operand_dtype)
    fc1_wq = fc1_w_pad.astype(operand_dtype)
    head_wq = head_w_pad.astype(operand_dtype)

    flops = (2 * Bp * N * (D_in * D_ae + D_ae * E * Hp)
             + 2 * Bp * (Hp * fc_hidden + fc_hidden * Tp))
    bytes_accessed = (xq.size * xq.dtype.itemsize
                      + ae_wq.size * ae_wq.dtype.itemsize + ae_b.size * 4
                      + wcq.size * wcq.dtype.itemsize
                      + fc1_wq.size * fc1_wq.dtype.itemsize + fc1_b.size * 4
                      + head_wq.size * head_wq.dtype.itemsize
                      + head_b_pad.size * 4
                      + Bp * Tp * 4)

    kernel = partial(repset_kernel, n_hidden_padded=Hp, n_elements=E)

    out = pl.pallas_call(
        kernel,
        out_shape=jax.ShapeDtypeStruct((Bp, Tp), jnp.float32),
        grid=(num_tiles,),
        in_specs=[
            pl.BlockSpec((TB, N, D_in), lambda b: (b, 0, 0)),   # TB bags per step
            pl.BlockSpec(ae_wq.shape, lambda b: (0, 0)),        # weights: full blocks
            pl.BlockSpec(ae_b.shape, lambda b: (0, 0)),
            pl.BlockSpec(wcq.shape, lambda b: (0, 0)),
            pl.BlockSpec(fc1_wq.shape, lambda b: (0, 0)),
            pl.BlockSpec(fc1_b.shape, lambda b: (0, 0)),
            pl.BlockSpec(head_wq.shape, lambda b: (0, 0)),
            pl.BlockSpec(head_b_pad.shape, lambda b: (0, 0)),
        ],
        out_specs=pl.BlockSpec((TB, Tp), lambda b: (b, 0)),     # lane-dense output
        compiler_params=pltpu.CompilerParams(
            dimension_semantics=("parallel",)),
        cost_estimate=pl.CostEstimate(flops=flops, transcendentals=0,
                                      bytes_accessed=bytes_accessed),
    )(xq, ae_wq, ae_b, wcq, fc1_wq, fc1_b, head_wq, head_b_pad)

    out = out[:B, :total]                 # drop batch padding + lane padding

    # split concatenated head output back into the task dict
    outputs, off = {}, 0
    for name, c in task_dims.items():
        outputs[name] = out[:, off:off + c]
        off += c
    return outputs


def _xavier_uniform(key, fan_in, fan_out):
    bound = (6.0 / (fan_in + fan_out)) ** 0.5
    return jax.random.uniform(key, (fan_in, fan_out), jnp.float32, -bound, bound)


def reference_forward(x, params, *, n_hidden_sets, n_elements, task_dims):
    # pure-JAX reference mirroring the PyTorch module
    ae_w, ae_b, wc, fc1_w, fc1_b, head_w, head_b = params
    B, N, _ = x.shape
    t = jax.nn.relu(x @ ae_w + ae_b)                       # base_network
    t = jax.nn.relu(t @ wc)                                # (B, N, H*E)
    t = t.reshape(B, N, n_elements, n_hidden_sets)
    t = jnp.max(t, axis=2)                                 # (B, N, H)
    t = jnp.sum(t, axis=1)                                 # (B, H)
    t = jax.nn.relu(t @ fc1_w + fc1_b)                     # (B, 32)
    out = t @ head_w + head_b
    outputs, off = {}, 0
    for name, c in task_dims.items():
        outputs[name] = out[:, off:off + c]
        off += c
    return outputs


if __name__ == "__main__":
    # config
    B, N, D_in = 2, 8, 24
    autoencoder_layer_sizes = [D_in, 32]        # one Linear(24,32)+ReLU
    D_ae = autoencoder_layer_sizes[-1]
    n_hidden_sets, n_elements = 16, 4
    task_dims = {"task_a": 3, "task_b": 5}
    fc_hidden = 32
    total_classes = sum(task_dims.values())

    key = jax.random.PRNGKey(0)
    kx, k_ae, k_wc, k_fc1, k_ha, k_hb, kx2 = jax.random.split(key, 7)

    x = jax.random.normal(kx, (B, N, D_in), jnp.float32)

    # deterministic xavier-uniform parameters (biases zero, as in init_weights)
    ae_w = _xavier_uniform(k_ae, D_in, D_ae)
    ae_b = jnp.zeros((1, D_ae), jnp.float32)
    wc = _xavier_uniform(k_wc, D_ae, n_hidden_sets * n_elements)
    fc1_w = _xavier_uniform(k_fc1, n_hidden_sets, fc_hidden)
    fc1_b = jnp.zeros((1, fc_hidden), jnp.float32)
    head_keys = {"task_a": k_ha, "task_b": k_hb}
    head_w = jnp.concatenate(
        [_xavier_uniform(head_keys[name], fc_hidden, c)
         for name, c in task_dims.items()], axis=1)        # (32, total_classes)
    head_b = jnp.zeros((1, total_classes), jnp.float32)

    params = (ae_w, ae_b, wc, fc1_w, fc1_b, head_w, head_b)

    # f32 path: tiny batch -> whole batch in a single grid step
    outs = approx_repset_forward(
        x, params, n_hidden_sets=n_hidden_sets, n_elements=n_elements,
        task_dims=task_dims)
    jax.block_until_ready(outs)
    refs = reference_forward(
        x, params, n_hidden_sets=n_hidden_sets, n_elements=n_elements,
        task_dims=task_dims)
    for name in task_dims:
        assert outs[name].shape == (B, task_dims[name])
        assert jnp.allclose(outs[name], refs[name], atol=2e-5, rtol=2e-5)

    # larger batch exercising the multi-tile (grid > 1, padded B) path, f32
    B2 = 40
    x2 = jax.random.normal(kx2, (B2, N, D_in), jnp.float32)
    outs2 = approx_repset_forward(
        x2, params, n_hidden_sets=n_hidden_sets, n_elements=n_elements,
        task_dims=task_dims)
    jax.block_until_ready(outs2)
    refs2 = reference_forward(
        x2, params, n_hidden_sets=n_hidden_sets, n_elements=n_elements,
        task_dims=task_dims)
    for name in task_dims:
        assert outs2[name].shape == (B2, task_dims[name])
        assert jnp.allclose(outs2[name], refs2[name], atol=2e-5, rtol=2e-5)

    # bf16 matmul operands (v6e/v7x fast path); f32 accumulation + bias/ReLU
    outs_bf16 = approx_repset_forward(
        x, params, n_hidden_sets=n_hidden_sets, n_elements=n_elements,
        task_dims=task_dims, operand_dtype=jnp.bfloat16)
    jax.block_until_ready(outs_bf16)
    for name in task_dims:
        assert jnp.allclose(outs_bf16[name], refs[name], atol=1.5e-1, rtol=1e-1)

    print("KERNEL_OK")
</pallas_src>

<mosaic_0001>
module attributes {stable_mosaic.version = 11 : i64} {
  func.func @repset_kernel(%arg0: i32, %arg1: memref<2x8x24xf32, #tpu.memory_space<vmem>>, %arg2: memref<24x32xf32, #tpu.memory_space<vmem>>, %arg3: memref<1x32xf32, #tpu.memory_space<vmem>>, %arg4: memref<32x512xf32, #tpu.memory_space<vmem>>, %arg5: memref<128x32xf32, #tpu.memory_space<vmem>>, %arg6: memref<1x32xf32, #tpu.memory_space<vmem>>, %arg7: memref<32x128xf32, #tpu.memory_space<vmem>>, %arg8: memref<1x128xf32, #tpu.memory_space<vmem>>, %arg9: memref<2x128xf32, #tpu.memory_space<vmem>>) attributes {dimension_semantics = [#tpu.dimension_semantics<parallel>], iteration_bounds = array<i64: 1>, scalar_prefetch = 0 : i64, scratch_operands = 0 : i64, tpu.core_type = #tpu.core_type<tc>, window_params = [{transform_indices = @transform_0, window_bounds = array<i64: 2, 8, 24>}, {pipeline_mode = #tpu.pipeline_mode<synchronous>, transform_indices = @transform_1, window_bounds = array<i64: 24, 32>}, {pipeline_mode = #tpu.pipeline_mode<synchronous>, transform_indices = @transform_2, window_bounds = array<i64: 1, 32>}, {pipeline_mode = #tpu.pipeline_mode<synchronous>, transform_indices = @transform_3, window_bounds = array<i64: 32, 512>}, {pipeline_mode = #tpu.pipeline_mode<synchronous>, transform_indices = @transform_4, window_bounds = array<i64: 128, 32>}, {pipeline_mode = #tpu.pipeline_mode<synchronous>, transform_indices = @transform_5, window_bounds = array<i64: 1, 32>}, {pipeline_mode = #tpu.pipeline_mode<synchronous>, transform_indices = @transform_6, window_bounds = array<i64: 32, 128>}, {pipeline_mode = #tpu.pipeline_mode<synchronous>, transform_indices = @transform_7, window_bounds = array<i64: 1, 128>}, {transform_indices = @transform_8, window_bounds = array<i64: 2, 128>}]} {
    %c0 = arith.constant 0 : index
    %c0_0 = arith.constant 0 : index
    %c0_1 = arith.constant 0 : index
    %0 = vector.load %arg1[%c0, %c0_0, %c0_1] : memref<2x8x24xf32, #tpu.memory_space<vmem>>, vector<2x8x24xf32>
    %1 = vector.shape_cast %0 : vector<2x8x24xf32> to vector<16x24xf32>
    %c0_2 = arith.constant 0 : index
    %c0_3 = arith.constant 0 : index
    %2 = vector.load %arg2[%c0_2, %c0_3] : memref<24x32xf32, #tpu.memory_space<vmem>>, vector<24x32xf32>
    %cst = arith.constant dense<0.000000e+00> : vector<16x32xf32>
    %3 = tpu.matmul %1, %2, %cst {dimension_numbers = #tpu.dot_dimension_numbers<[1], [0], [0], [1], [0, 0, 1, 1], [], []>} : vector<16x24xf32>, vector<24x32xf32>, vector<16x32xf32> -> vector<16x32xf32>
    %c0_4 = arith.constant 0 : index
    %c0_5 = arith.constant 0 : index
    %4 = vector.load %arg3[%c0_4, %c0_5] : memref<1x32xf32, #tpu.memory_space<vmem>>, vector<1x32xf32>
    %5 = vector.broadcast %4 : vector<1x32xf32> to vector<16x32xf32>
    %6 = arith.addf %3, %5 : vector<16x32xf32>
    %cst_6 = arith.constant 0.000000e+00 : f32
    %7 = vector.broadcast %cst_6 : f32 to vector<16x32xf32>
    %8 = arith.maximumf %6, %7 : vector<16x32xf32>
    %c0_7 = arith.constant 0 : index
    %c0_8 = arith.constant 0 : index
    %9 = vector.load %arg4[%c0_7, %c0_8] : memref<32x512xf32, #tpu.memory_space<vmem>>, vector<32x512xf32>
    %cst_9 = arith.constant dense<0.000000e+00> : vector<16x512xf32>
    %10 = tpu.matmul %8, %9, %cst_9 {dimension_numbers = #tpu.dot_dimension_numbers<[1], [0], [0], [1], [0, 0, 1, 1], [], []>} : vector<16x32xf32>, vector<32x512xf32>, vector<16x512xf32> -> vector<16x512xf32>
    %cst_10 = arith.constant 0.000000e+00 : f32
    %11 = vector.broadcast %cst_10 : f32 to vector<16x512xf32>
    %12 = arith.maximumf %10, %11 : vector<16x512xf32>
    %13 = vector.extract_strided_slice %12 {offsets = [0, 0], sizes = [16, 128], strides = [1, 1]} : vector<16x512xf32> to vector<16x128xf32>
    %14 = vector.extract_strided_slice %12 {offsets = [0, 128], sizes = [16, 128], strides = [1, 1]} : vector<16x512xf32> to vector<16x128xf32>
    %15 = arith.maximumf %13, %14 : vector<16x128xf32>
    %16 = vector.extract_strided_slice %12 {offsets = [0, 256], sizes = [16, 128], strides = [1, 1]} : vector<16x512xf32> to vector<16x128xf32>
    %17 = arith.maximumf %15, %16 : vector<16x128xf32>
    %18 = vector.extract_strided_slice %12 {offsets = [0, 384], sizes = [16, 128], strides = [1, 1]} : vector<16x512xf32> to vector<16x128xf32>
    %19 = arith.maximumf %17, %18 : vector<16x128xf32>
    %20 = vector.shape_cast %19 : vector<16x128xf32> to vector<2x8x128xf32>
    %cst_11 = arith.constant dense<0.000000e+00> : vector<2x128xf32>
    %21 = vector.multi_reduction <add>, %20, %cst_11 [1] : vector<2x8x128xf32> to vector<2x128xf32>
    %c0_12 = arith.constant 0 : index
    %c0_13 = arith.constant 0 : index
    %22 = vector.load %arg5[%c0_12, %c0_13] : memref<128x32xf32, #tpu.memory_space<vmem>>, vector<128x32xf32>
    %cst_14 = arith.constant dense<0.000000e+00> : vector<2x32xf32>
    %23 = tpu.matmul %21, %22, %cst_14 {dimension_numbers = #tpu.dot_dimension_numbers<[1], [0], [0], [1], [0, 0, 1, 1], [], []>} : vector<2x128xf32>, vector<128x32xf32>, vector<2x32xf32> -> vector<2x32xf32>
    %c0_15 = arith.constant 0 : index
    %c0_16 = arith.constant 0 : index
    %24 = vector.load %arg6[%c0_15, %c0_16] : memref<1x32xf32, #tpu.memory_space<vmem>>, vector<1x32xf32>
    %25 = vector.broadcast %24 : vector<1x32xf32> to vector<2x32xf32>
    %26 = arith.addf %23, %25 : vector<2x32xf32>
    %cst_17 = arith.constant 0.000000e+00 : f32
    %27 = vector.broadcast %cst_17 : f32 to vector<2x32xf32>
    %28 = arith.maximumf %26, %27 : vector<2x32xf32>
    %c0_18 = arith.constant 0 : index
    %c0_19 = arith.constant 0 : index
    %29 = vector.load %arg7[%c0_18, %c0_19] : memref<32x128xf32, #tpu.memory_space<vmem>>, vector<32x128xf32>
    %cst_20 = arith.constant dense<0.000000e+00> : vector<2x128xf32>
    %30 = tpu.matmul %28, %29, %cst_20 {dimension_numbers = #tpu.dot_dimension_numbers<[1], [0], [0], [1], [0, 0, 1, 1], [], []>} : vector<2x32xf32>, vector<32x128xf32>, vector<2x128xf32> -> vector<2x128xf32>
    %c0_21 = arith.constant 0 : index
    %c0_22 = arith.constant 0 : index
    %31 = vector.load %arg8[%c0_21, %c0_22] : memref<1x128xf32, #tpu.memory_space<vmem>>, vector<1x128xf32>
    %32 = vector.broadcast %31 : vector<1x128xf32> to vector<2x128xf32>
    %33 = arith.addf %30, %32 : vector<2x128xf32>
    %c0_23 = arith.constant 0 : index
    %c0_24 = arith.constant 0 : index
    %34 = vector.load %arg9[%c0_23, %c0_24] : memref<2x128xf32, #tpu.memory_space<vmem>>, vector<2x128xf32>
    tpu.vector_store %arg9[%c0_23, %c0_24], %33 {strides = array<i32>} : memref<2x128xf32, #tpu.memory_space<vmem>>, vector<2x128xf32>,
    return
  }
  func.func @transform_0(%arg0: i32) -> (i32, i32, i32) {
    %c0_i32 = arith.constant 0 : i32
    %c0_i32_0 = arith.constant 0 : i32
    %c0_i32_1 = arith.constant 0 : i32
    return %arg0, %c0_i32, %c0_i32_0 : i32, i32, i32
  }
  func.func @transform_1(%arg0: i32) -> (i32, i32) {
    %c0_i32 = arith.constant 0 : i32
    %c0_i32_0 = arith.constant 0 : i32
    %c0_i32_1 = arith.constant 0 : i32
    return %c0_i32, %c0_i32_0 : i32, i32
  }
  func.func @transform_2(%arg0: i32) -> (i32, i32) {
    %c0_i32 = arith.constant 0 : i32
    %c0_i32_0 = arith.constant 0 : i32
    %c0_i32_1 = arith.constant 0 : i32
    return %c0_i32, %c0_i32_0 : i32, i32
  }
  func.func @transform_3(%arg0: i32) -> (i32, i32) {
    %c0_i32 = arith.constant 0 : i32
    %c0_i32_0 = arith.constant 0 : i32
    %c0_i32_1 = arith.constant 0 : i32
    return %c0_i32, %c0_i32_0 : i32, i32
  }
  func.func @transform_4(%arg0: i32) -> (i32, i32) {
    %c0_i32 = arith.constant 0 : i32
    %c0_i32_0 = arith.constant 0 : i32
    %c0_i32_1 = arith.constant 0 : i32
    return %c0_i32, %c0_i32_0 : i32, i32
  }
  func.func @transform_5(%arg0: i32) -> (i32, i32) {
    %c0_i32 = arith.constant 0 : i32
    %c0_i32_0 = arith.constant 0 : i32
    %c0_i32_1 = arith.constant 0 : i32
    return %c0_i32, %c0_i32_0 : i32, i32
  }
  func.func @transform_6(%arg0: i32) -> (i32, i32) {
    %c0_i32 = arith.constant 0 : i32
    %c0_i32_0 = arith.constant 0 : i32
    %c0_i32_1 = arith.constant 0 : i32
    return %c0_i32, %c0_i32_0 : i32, i32
  }
  func.func @transform_7(%arg0: i32) -> (i32, i32) {
    %c0_i32 = arith.constant 0 : i32
    %c0_i32_0 = arith.constant 0 : i32
    %c0_i32_1 = arith.constant 0 : i32
    return %c0_i32, %c0_i32_0 : i32, i32
  }
  func.func @transform_8(%arg0: i32) -> (i32, i32) {
    %c0_i32 = arith.constant 0 : i32
    %c0_i32_0 = arith.constant 0 : i32
    return %arg0, %c0_i32 : i32, i32
  }
}

</mosaic_0001>

<bundles_post_ra>
// kernel: tpu_custom_call.1
= control target key start
LH: loop header
LB: loop body
LE: loop exit
PB: predicated region body
PF: predicated region fallthrough
CT: control target
= control target key end

     0   :  { %13 = vsyncpa [#allocation3], 0  ;;  %s931_s0 = inlined_call_operand.hbm [shape: f32[2,8,24], index: 0, kind: input, shape index: {}]   ;;  %s932_s1 = inlined_call_operand.hbm [shape: f32[24,32], index: 1, kind: input, shape index: {}]   ;;  %s933_s2 = inlined_call_operand.vmem [shape: f32[1,32], index: 2, kind: input, shape index: {}]   ;;  %s934_s3 = inlined_call_operand.vmem [shape: f32[32,512], index: 3, kind: input, shape index: {}]   ;;  %s935_s4 = inlined_call_operand.vmem [shape: f32[128,32], index: 4, kind: input, shape index: {}]   ;;  %s936_s5 = inlined_call_operand.vmem [shape: f32[1,32], index: 5, kind: input, shape index: {}]   ;;  %s937_s6 = inlined_call_operand.vmem [shape: f32[32,128], index: 6, kind: input, shape index: {}]   ;;  %s938_s7 = inlined_call_operand.vmem [shape: f32[1,128], index: 7, kind: input, shape index: {}]   ;;  %s939_s8 = inlined_call_operand.hbm [shape: f32[2,128], index: 8, kind: output, shape index: {}]  }
   0x1   :  { %14 = vsyncpa [#allocation6], 0 }
   0x2   :  { %15 = vsyncpa [#allocation4], 0  ;;  %s722_s27 = smov [#allocation2]  }
   0x3   :  { %s21_s28 = sshll.u32 %s722_s27, 4  ;;  %s22_s28 = int_to_ptr.vmem [resolvable:$true] %s21_s28 }
   0x4   :  { %s664_s29 = scalar_lea.vmem %s22_s28, 256  ;;  %p669_p1 = scmp.lt.s32.totalorder %s22_s28, %s22_s28 }
   0x5   :  { %p665_p0 = scmp.ne.s32.totalorder %s22_s28, %s664_s29  ;;  %p670_p2 = scmp.lt.s32.totalorder %s664_s29, %s664_s29 }
   0x7   :  { %p671_p3 = por %p670_p2, %p669_p1 }
   0x9   :  { %p672_p4 = pnand %p671_p3, %p665_p0 }
   0xb   :  { %675 = shalt.err (!%p672_p4)
}
   0xc   :  { %s723_s30 = smov 128   ;;  %s724_s9 = smov 8  }
   0xd   :  { %27 = dma.hbm_to_vmem [thread:$0]  %s931_s0, 256, %s22_s28, [#allocation3], %s723_s30, %s723_s30, %s724_s9  }
   0xe   :  { %s725_s12 = smov [#allocation5]  }
   0xf   :  { %s33_s13 = sshll.u32 %s725_s12, 4  ;;  %s34_s13 = int_to_ptr.vmem [resolvable:$true] %s33_s13 }
  0x10   :  { %s684_s14 = scalar_lea.vmem %s34_s13, 384  ;;  %p689_p6 = scmp.lt.s32.totalorder %s34_s13, %s34_s13 }
  0x11   :  { %p685_p5 = scmp.ne.s32.totalorder %s34_s13, %s684_s14  ;;  %p690_p7 = scmp.lt.s32.totalorder %s684_s14, %s684_s14 }
  0x13   :  { %p691_p8 = por %p690_p7, %p689_p6 }
  0x15   :  { %p692_p9 = pnand %p691_p8, %p685_p5 }
  0x17   :  { %695 = shalt.err (!%p692_p9)
}
  0x18   :  { %39 = dma.hbm_to_vmem [thread:$0]  %s932_s1, 384, %s34_s13, [#allocation6], %s723_s30, %s723_s30, %s724_s9  }
  0x19   :  { %716 = dma.done.wait [#allocation3], 256  }
  0x1a   :  { %717 = vsyncadd [#allocation3], 4294967040 }
  0x1b   :  { %718 = dma.done.wait [#allocation6], 384  }
  0x1c   :  { %719 = vsyncadd [#allocation6], 4294966912  ;;  %vm70_vm0 = vcmask 195584   ;;  %v62_v0 = vld [vmem:[#allocation5 + $0x10] sm:$0xff]  ;;  %v61_v1 = vld [vmem:[#allocation5 + $0x8] sm:$0xff]  ;;  %v726_v14 = vmov 0.0  }
  0x1d   :  { %594 = vmatprep.subr.mxu0 %v62_v0  ;;  %v58_v2 = vld [vmem:[#allocation2] sm:$0xff]  ;;  %v60_v3 = vld [vmem:[#allocation5] sm:$0xff]  ;;  %v59_v4 = vld [vmem:[#allocation2 + $0x8] sm:$0xff]  ;;  %603 = vmatprep.subr.mxu1 %v726_v14  ;;  %vm170_vm1 = vcmask 261120   ;;  %vm727_vm2 = vmmov 0   ;;  %vm382_vm3 = vcmask 1041409  }
  0x1e   :  { %595 = vmatpush3.msra.mxu0 %v62_v0  ;;  %600 = vmatprep.mubr.msk.f32.mxu0 %vm70_vm0, %v58_v2  ;;  %v167_v5 = vld [vmem:[%s934_s3 + $0x68] sm:$0xff]  ;;  %v166_v6 = vld [vmem:[%s934_s3 + $0x60] sm:$0xff]  ;;  %v169_v13 = vld [vmem:[%s934_s3 + $0x78] sm:$0xff]  ;;  %s728_s17 = smov [#allocation7]  }
  0x1f   :  { %596 = vmatprep.subr.mxu0 %v61_v1  ;;  %v163_v7 = vld [vmem:[%s934_s3 + $0x48] sm:$0xff]  ;;  %v162_v8 = vld [vmem:[%s934_s3 + $0x40] sm:$0xff]  ;;  %v168_v21 = vld [vmem:[%s934_s3 + $0x70] sm:$0xff]  ;;  %635 = vmatprep.mubr.msk.f32.mxu1 %vm727_vm2, %v726_v14 }
  0x20   :  { %597 = vmatpush3.msra.mxu0 %v61_v1  ;;  %v159_v9 = vld [vmem:[%s934_s3 + $0x28] sm:$0xff]  ;;  %v158_v10 = vld [vmem:[%s934_s3 + $0x20] sm:$0xff]  ;;  %v165_v22 = vld [vmem:[%s934_s3 + $0x58] sm:$0xff] }
  0x21   :  { %598 = vmatprep.subr.mxu0 %v60_v3  ;;  %v155_v11 = vld [vmem:[%s934_s3 + $0x8] sm:$0xff]  ;;  %v154_v12 = vld [vmem:[%s934_s3] sm:$0xff]  ;;  %v164_v23 = vld [vmem:[%s934_s3 + $0x50] sm:$0xff] }
  0x22   :  { %599 = vmatpush3.msra.mxu0 %v60_v3  ;;  %v557_v16 = vld [vmem:[%s933_s2] ss:$0 sm:$0xff]  ;;  %v161_v24 = vld [vmem:[%s934_s3 + $0x38] sm:$0xff]  ;;  %v160_v26 = vld [vmem:[%s934_s3 + $0x30] sm:$0xff]  ;;  %s547_s2 = sshll.u32 %s728_s17, 4  ;;  %s548_s2 = int_to_ptr.vmem [resolvable:$true] %s547_s2 }
  0x23   :  { %601 = vmatmul.mubr.msk.f32.vlgmr.msra.gmra.mxu0 %vm70_vm0, %v59_v4  ;;  %201 = vmatprep.subr.mxu0 %v167_v5  ;;  %v157_v27 = vld [vmem:[%s934_s3 + $0x18] sm:$0xff]  ;;  %v156_v28 = vld [vmem:[%s934_s3 + $0x10] sm:$0xff]  ;;  %v370_v31 = vld [vmem:[%s935_s4 + $0x68] sm:$0xff]  ;;  %p701_p11 = scmp.lt.s32.totalorder %s548_s2, %s548_s2 }
  0x24   :  { %202 = vmatpush1.msra.mxu0 %v166_v6  ;;  %241 = vmatprep.mubr.f32.mxu0 %v726_v14  ;;  %v372_v29 = vld [vmem:[%s935_s4 + $0x78] sm:$0xff]  ;;  %v371_v30 = vld [vmem:[%s935_s4 + $0x70] sm:$0xff]  ;;  %v369_v32 = vld [vmem:[%s935_s4 + $0x60] sm:$0xff] }
  0x25   :  { %203 = vmatprep.subr.mxu0 %v163_v7  ;;  %604 = vmatpush3.msra.mxu1 %v372_v29  ;;  %v368_v33 = vld [vmem:[%s935_s4 + $0x58] sm:$0xff]  ;;  %v367_v34 = vld [vmem:[%s935_s4 + $0x50] sm:$0xff]  ;;  %v366_v35 = vld [vmem:[%s935_s4 + $0x48] sm:$0xff] }
  0x26   :  { %204 = vmatpush1.msra.mxu0 %v162_v8  ;;  %605 = vmatprep.subr.mxu1 %v726_v14  ;;  %v365_v36 = vld [vmem:[%s935_s4 + $0x40] sm:$0xff]  ;;  %v364_v37 = vld [vmem:[%s935_s4 + $0x38] sm:$0xff]  ;;  %v363_v38 = vld [vmem:[%s935_s4 + $0x30] sm:$0xff] }
  0x27   :  { %205 = vmatprep.subr.mxu0 %v159_v9  ;;  %606 = vmatpush3.msra.mxu1 %v371_v30  ;;  %v362_v39 = vld [vmem:[%s935_s4 + $0x28] sm:$0xff]  ;;  %v361_v40 = vld [vmem:[%s935_s4 + $0x20] sm:$0xff]  ;;  %v360_v41 = vld [vmem:[%s935_s4 + $0x18] sm:$0xff] }
  0x28   :  { %206 = vmatpush1.msra.mxu0 %v158_v10  ;;  %607 = vmatprep.subr.mxu1 %v726_v14  ;;  %v359_v42 = vld [vmem:[%s935_s4 + $0x10] sm:$0xff]  ;;  %v358_v43 = vld [vmem:[%s935_s4 + $0x8] sm:$0xff]  ;;  %v357_v44 = vld [vmem:[%s935_s4] sm:$0xff] }
  0x29   :  { %207 = vmatprep.subr.mxu0 %v155_v11  ;;  %608 = vmatpush3.msra.mxu1 %v370_v31  ;;  %v459_v45 = vld [vmem:[%s937_s6 + $0x18] sm:$0xff]  ;;  %v458_v46 = vld [vmem:[%s937_s6 + $0x10] sm:$0xff] }
  0x2a   :  { %208 = vmatpush1.msra.mxu0 %v154_v12  ;;  %609 = vmatprep.subr.mxu1 %v726_v14 }
  0x2b   :  { %278 = vmatprep.subr.mxu0 %v169_v13  ;;  %610 = vmatpush3.msra.mxu1 %v369_v32 }
  0x2c   :  { %611 = vmatprep.subr.mxu1 %v726_v14 }
  0x2d   :  { %612 = vmatpush3.msra.mxu1 %v368_v33 }
  0x2e   :  { %613 = vmatprep.subr.mxu1 %v726_v14 }
  0x2f   :  { %614 = vmatpush3.msra.mxu1 %v367_v34 }
  0x30   :  { %615 = vmatprep.subr.mxu1 %v726_v14 }
  0x31   :  { %616 = vmatpush3.msra.mxu1 %v366_v35 }
  0x32   :  { %617 = vmatprep.subr.mxu1 %v726_v14 }
  0x33   :  { %618 = vmatpush3.msra.mxu1 %v365_v36 }
  0x34   :  { %619 = vmatprep.subr.mxu1 %v726_v14 }
  0x35   :  { %620 = vmatpush3.msra.mxu1 %v364_v37 }
  0x36   :  { %621 = vmatprep.subr.mxu1 %v726_v14 }
  0x37   :  { %622 = vmatpush3.msra.mxu1 %v363_v38 }
  0x38   :  { %623 = vmatprep.subr.mxu1 %v726_v14 }
  0x39   :  { %624 = vmatpush3.msra.mxu1 %v362_v39 }
  0x3a   :  { %625 = vmatprep.subr.mxu1 %v726_v14 }
  0x3b   :  { %626 = vmatpush3.msra.mxu1 %v361_v40 }
  0x3c   :  { %627 = vmatprep.subr.mxu1 %v726_v14 }
  0x3d   :  { %628 = vmatpush3.msra.mxu1 %v360_v41 }
  0x3e   :  { %629 = vmatprep.subr.mxu1 %v726_v14 }
  0x3f   :  { %630 = vmatpush3.msra.mxu1 %v359_v42 }
  0x40   :  { %631 = vmatprep.subr.mxu1 %v726_v14 }
  0x41   :  { %632 = vmatpush3.msra.mxu1 %v358_v43 }
  0x42   :  { %633 = vmatprep.subr.mxu1 %v726_v14 }
  0x43   :  { %634 = vmatpush3.msra.mxu1 %v357_v44 }
  0xe3   :  { %v602_v15 = vpop.f32.mrf.mxu0 }
  0xe4   :  { %v149_v19 = vadd.f32 %v602_v15, %v557_v16 }
  0xe5   :  { %v143_v17 = vpop.f32.mrf.mxu0 }
  0xe6   :  { %v144_v18 = vadd.f32 %v557_v16, %v143_v17  ;;  %v153_v25 = vmax.f32 %v149_v19, 0.0  ;;  %v457_v19 = vld [vmem:[%s937_s6 + $0x8] sm:$0xff] }
  0xe8   :  { %v152_v20 = vmax.f32 %v144_v18, 0.0 }
  0xea   :  { %560 = vmatmul.mubr.msk.f32.vlgmr.msra.gmra.mxu0 %vm170_vm1, %v152_v20 }
  0xeb   :  { %279 = vmatpush1.msra.mxu0 %v168_v21  ;;  %247 = vmatprep.mubr.f32.mxu0 %v726_v14  ;;  %v564_v21 = vld [vmem:[%s936_s5] ss:$0 sm:$0xff] }
  0xec   :  { %280 = vmatprep.subr.mxu0 %v165_v22 }
  0xed   :  { %281 = vmatpush1.msra.mxu0 %v164_v23 }
  0xee   :  { %282 = vmatprep.subr.mxu0 %v161_v24  ;;  %561 = vmatmul.mubr.msk.f32.gmra.mxu0 %vm170_vm1, %v153_v25 }
  0xef   :  { %283 = vmatpush1.msra.mxu0 %v160_v26  ;;  %318 = vmatprep.mubr.f32.mxu0 %v726_v14  ;;  %v565_v26 = vld [vmem:[%s938_s7] ss:$0 sm:$0xff] }
  0xf0   :  { %284 = vmatprep.subr.mxu0 %v157_v27 }
  0xf1   :  { %285 = vmatpush1.msra.mxu0 %v156_v28 }
  0xf2   :  { %562 = vmatmul.mubr.msk.f32.vlgmr.msra.gmra.mxu0 %vm170_vm1, %v152_v20  ;;  %638 = vmatprep.subr.mxu0 %v726_v14  ;;  %v456_v20 = vld [vmem:[%s937_s6] sm:$0xff]  ;;  %s696_s6 = scalar_lea.vmem %s548_s2, 32 }
  0xf3   :  { %324 = vmatprep.mubr.f32.mxu0 %v726_v14  ;;  %639 = vmatpush3.msra.mxu0 %v459_v45  ;;  %p697_p10 = scmp.ne.s32.totalorder %s548_s2, %s696_s6  ;;  %p702_p12 = scmp.lt.s32.totalorder %s696_s6, %s696_s6 }
  0xf4   :  { %640 = vmatprep.subr.mxu0 %v726_v14 }
  0xf5   :  { %641 = vmatpush3.msra.mxu0 %v458_v46  ;;  %p703_p13 = por %p702_p12, %p701_p11 }
  0xf6   :  { %563 = vmatmul.mubr.msk.f32.gmra.mxu0 %vm170_vm1, %v153_v25  ;;  %642 = vmatprep.subr.mxu0 %v726_v14 }
  0xf7   :  { %646 = vmatprep.mubr.msk.f32.mxu0 %vm727_vm2, %v726_v14  ;;  %643 = vmatpush3.msra.mxu0 %v457_v19  ;;  %p704_p0 = pnand %p703_p13, %p697_p10 }
  0xf8   :  { %644 = vmatprep.subr.mxu0 %v726_v14 }
  0xf9   :  { %645 = vmatpush3.msra.mxu0 %v456_v20 }
 0x1aa   :  { %v243_v47 = vpop.f32.mrf.mxu0 }
 0x1ab   :  { %v331_v52 = vmax.f32 %v243_v47, 0.0 }
 0x1ac   :  { %v245_v48 = vpop.f32.mrf.mxu0 }
 0x1ad   :  { %v332_v50 = vmax.f32 %v245_v48, 0.0 }
 0x1ae   :  { %v249_v49 = vpop.f32.mrf.mxu0 }
 0x1af   :  { %v339_v54 = vmax.f32 %v331_v52, %v332_v50  ;;  %v335_v58 = vmax.f32 %v249_v49, 0.0 }
 0x1b0   :  { %v251_v51 = vpop.f32.mrf.mxu0 }
 0x1b1   :  { %v336_v55 = vmax.f32 %v251_v51, 0.0 }
 0x1b2   :  { %v320_v53 = vpop.f32.mrf.mxu0 }
 0x1b3   :  { %v333_v56 = vmax.f32 %v320_v53, 0.0  ;;  %v340_v62 = vmax.f32 %v335_v58, %v336_v55 }
 0x1b4   :  { %v322_v57 = vpop.f32.mrf.mxu0 }
 0x1b5   :  { %v341_v59 = vmax.f32 %v339_v54, %v333_v56  ;;  %v334_v60 = vmax.f32 %v322_v57, 0.0 }
 0x1b6   :  { %v326_v61 = vpop.f32.mrf.mxu0 }
 0x1b7   :  { %v343_v63 = vmax.f32 %v341_v59, %v334_v60  ;;  %v337_v0 = vmax.f32 %v326_v61, 0.0 }
 0x1b8   :  { %v328_v1 = vpop.f32.mrf.mxu0 }
 0x1b9   :  { %v345_v2 = vrot.slane %v343_v63, 4  ;;  %v342_v3 = vmax.f32 %v340_v62, %v337_v0  ;;  %v338_v4 = vmax.f32 %v328_v1, 0.0 }
 0x1bb   :  { %v346_v5 = vadd.f32 %v345_v2, %v343_v63  ;;  %v344_v6 = vmax.f32 %v342_v3, %v338_v4 }
 0x1bd   :  { %v347_v7 = vrot.slane %v346_v5, 2  ;;  %v351_v8 = vrot.slane %v344_v6, 4 }
 0x1bf   :  { %v348_v9 = vadd.f32 %v347_v7, %v346_v5  ;;  %v352_v10 = vadd.f32 %v351_v8, %v344_v6 }
 0x1c1   :  { %v353_v11 = vrot.slane %v352_v10, 2  ;;  %v349_v13 = vrot.slane %v348_v9, 1 }
 0x1c3   :  { %v354_v12 = vadd.f32 %v353_v11, %v352_v10  ;;  %v350_v16 = vadd.f32 %v349_v13, %v348_v9 }
 0x1c5   :  { %v355_v15 = vrot.slane %v354_v12, 1 }
 0x1c7   :  { %v356_v17 = vadd.f32 %v355_v15, %v354_v12 }
 0x1c9   :  { %v383_v18 = vsel %vm382_vm3, %v356_v17, %v350_v16 }
 0x1ca   :  { %636 = vmatmul.mubr.f32.vlgmr.msra.gmra.mxu1 %v383_v18 }
 0x28a   :  { %v451_v22 = vpop.f32.mrf.mxu1 }
 0x28b   :  { %v452_v23 = vadd.f32 %v564_v21, %v451_v22 }
 0x28c   :  { %v637_v24 = vpop.f32.mrf.mxu1 }
 0x28d   :  { %v455_v25 = vmax.f32 %v452_v23, 0.0 }
 0x28f   :  { %647 = vmatmul.mubr.msk.f32.vlgmr.msra.gmra.mxu0 %vm170_vm1, %v455_v25 }
 0x34f   :  { %v536_v14 = vpop.f32.mrf.mxu0 }
 0x350   :  { %v537_v27 = vadd.f32 %v565_v26, %v536_v14 }
 0x351   :  { %v648_v28 = vpop.f32.mrf.mxu0 }
 0x352   :  { %540 = vst [vmem:[#allocation7] sm:$0x3] %v537_v27 }
 0x353   :  { %707 = shalt.err (!%p704_p0)
}
 0x354   :  { %550 = dma.vmem_to_hbm [thread:$0]  %s548_s2, 32, %s939_s8, [#allocation4]  }
 0x355   :  { %720 = dma.done.wait [#allocation4], 32  }
 0x356   :  { %721 = vsyncadd [#allocation4], 4294967264 }
 0x357   :  { %554 = vsyncpa [#allocation3], 1 }
 0x358   :  { %555 = vsyncpa [#allocation6], 1 }
 0x359   :  { %556 = vsyncpa [#allocation4], 1 }

</bundles_post_ra>
